<compile_context>
chip_gen: v6e
topology: v6e:2x2x1
jax: 0.10.0
libtpu: 0.0.40
codegen_flags: <defaults>
</compile_context>

<pallas_src>
import functools

import jax
import jax.numpy as jnp
from jax.experimental import pallas as pl
from jax.experimental.pallas import tpu as pltpu

PD = 128            # padded feature width (one lane tile)
IN_F = 14           # input features
HID = 20            # hidden width
ONE_IN = IN_F       # x_pad column carrying the constant 1.0 (bias trick)
ONE_HID = HID       # hidden-activation column carrying the constant 1.0
MAX_TILE_B = 512    # batch-tile cap
MAX_TN = 2048       # output-column tile cap


def _round_up(x, m):
    return (x + m - 1) // m * m


def _choose_tiles(batch, seq_len_f):
    # Batch tile: multiple of 16 (bf16 sublane packing), capped at 512,
    # sized to the batch so padding stays <16 rows per tile.
    b_tiles = pl.cdiv(batch, MAX_TILE_B)
    tile_b = min(MAX_TILE_B, _round_up(pl.cdiv(batch, b_tiles), 16))
    b_pad = tile_b * pl.cdiv(batch, tile_b)
    # N tile: multiple of 128 (lane-dense unmasked stores), capped at 2048,
    # sized to seq_len_f so padding stays <128 columns per tile.
    n_tiles = pl.cdiv(seq_len_f, MAX_TN)
    tn = min(MAX_TN, _round_up(pl.cdiv(seq_len_f, n_tiles), 128))
    n_pad = tn * pl.cdiv(seq_len_f, tn)
    return tile_b, b_pad, tn, n_pad


def _mlp_kernel(x_ref, wh_ref, wo_ref, o_ref, h_ref):
    # x_ref : (TILE_B, 128) bf16  -- col 14 holds the constant 1.0
    # wh_ref: (3, 128, 128) bf16  -- hidden weights, bias row + ones-carry col
    # wo_ref: (128, TN)     bf16  -- output weights, bias folded into row 20
    # o_ref : (TILE_B, TN)  f32
    # h_ref : (TILE_B, 128) bf16  -- VMEM-cached hidden activation
    @pl.when(pl.program_id(1) == 0)   # recompute h only on the first N tile
    def _():
        h = x_ref[...]
        for l in range(3):            # bias add is implicit via the ones column
            h = jnp.maximum(
                jnp.dot(h, wh_ref[l], preferred_element_type=jnp.float32), 0.0
            ).astype(jnp.bfloat16)
        h_ref[...] = h

    o_ref[...] = jnp.dot(
        h_ref[...], wo_ref[...], preferred_element_type=jnp.float32
    ).astype(o_ref.dtype)


def pack_params(params, seq_len_f, n_pad):
    """Pack (transposed) f32 weights+biases into 2 bf16 buffers with the
    bias-as-extra-row / ones-carry trick."""
    def hidden(w, b, in_dim):
        m = jnp.zeros((PD, PD), jnp.float32)
        m = m.at[:in_dim, :HID].set(w)              # weight block
        m = m.at[in_dim, :HID].set(b.reshape(-1))   # bias row
        m = m.at[in_dim, ONE_HID].set(1.0)          # carry the ones column
        return m

    wh = jnp.stack([
        hidden(params["w1"], params["b1"], IN_F),
        hidden(params["w2"], params["b2"], HID),
        hidden(params["w3"], params["b3"], HID),
    ]).astype(jnp.bfloat16)

    wo = jnp.zeros((PD, n_pad), jnp.float32)
    wo = wo.at[:HID, :seq_len_f].set(params["wo"])
    wo = wo.at[HID, :seq_len_f].set(params["bo"].reshape(-1))
    return wh, wo.astype(jnp.bfloat16)
    # TODO(synk): optional fp8(e4m3) wo path for v7x MXU (accuracy-dependent).


@functools.partial(jax.jit, static_argnames=("seq_len_f",))
def pp_mlp_forward(x, wh_pack, wo_pack, seq_len_f):
    """x: (batch, 14) float32. Returns (batch, seq_len_f) float32."""
    batch = x.shape[0]
    tile_b, b_pad, tn, n_pad = _choose_tiles(batch, seq_len_f)
    assert wo_pack.shape == (PD, n_pad), "wo_pack padded width mismatch"
    b_tiles, n_tiles = b_pad // tile_b, n_pad // tn

    # Lane-dense bf16 input slab with the bias-ones column (built once in the
    # wrapper; half the HBM bytes of the old f32 slab, no in-kernel cast).
    x_pad = jnp.zeros((b_pad, PD), jnp.bfloat16)
    x_pad = x_pad.at[:batch, :IN_F].set(x.astype(jnp.bfloat16))
    x_pad = x_pad.at[:batch, ONE_IN].set(jnp.bfloat16(1.0))

    # Hidden matmuls run once per batch tile; output matmul per (b, n) tile.
    flops = 3 * 2 * b_pad * PD * PD + 2 * b_pad * PD * n_pad
    bytes_accessed = (x_pad.size * 2                    # x, once per batch tile
                      + wh_pack.size * 2                # resident, fetched once
                      + wo_pack.size * 2 * b_tiles      # wo re-streamed per b tile
                      + b_pad * n_pad * 4)              # f32 output write

    # Double-buffered in/out streams + resident weights + h scratch, + margin.
    vmem_bytes = (2 * tile_b * PD * 2 + 2 * 3 * PD * PD * 2
                  + 2 * PD * tn * 2 + 2 * tile_b * tn * 4 + tile_b * PD * 2)
    vmem_limit = min(64 << 20, max(2 * vmem_bytes + (4 << 20), 16 << 20))

    out_pad = pl.pallas_call(
        _mlp_kernel,
        out_shape=jax.ShapeDtypeStruct((b_pad, n_pad), jnp.float32),
        grid_spec=pltpu.PrefetchScalarGridSpec(
            num_scalar_prefetch=0,
            grid=(b_tiles, n_tiles),
            in_specs=[
                pl.BlockSpec((tile_b, PD), lambda b, n: (b, 0)),    # x (per b tile)
                pl.BlockSpec((3, PD, PD), lambda b, n: (0, 0, 0)),  # hidden W (resident)
                pl.BlockSpec((PD, tn), lambda b, n: (0, n)),        # wo (streamed)
            ],
            out_specs=pl.BlockSpec((tile_b, tn), lambda b, n: (b, n)),
            scratch_shapes=[pltpu.VMEM((tile_b, PD), jnp.bfloat16)],  # h cache
        ),
        compiler_params=pltpu.CompilerParams(
            dimension_semantics=("parallel", "arbitrary"),
            vmem_limit_bytes=vmem_limit),
        cost_estimate=pl.CostEstimate(
            flops=flops, transcendentals=0, bytes_accessed=bytes_accessed),
    )(x_pad, wh_pack, wo_pack)

    return out_pad[:batch, :seq_len_f]


def init_params(key, seq_len_f):
    """PyTorch nn.Linear default init U[-1/sqrt(fan_in), 1/sqrt(fan_in)].
    Weights stored already transposed: shape (in_features, out_features)."""
    dims = [(IN_F, HID), (HID, HID), (HID, HID), (HID, seq_len_f)]
    names = ["1", "2", "3", "o"]
    params = {}
    for (fan_in, fan_out), name in zip(dims, names):
        key, kw, kb = jax.random.split(key, 3)
        bound = 1.0 / jnp.sqrt(jnp.float32(fan_in))
        params["w" + name] = jax.random.uniform(
            kw, (fan_in, fan_out), jnp.float32, -bound, bound)
        params["b" + name] = jax.random.uniform(
            kb, (1, fan_out), jnp.float32, -bound, bound)
    return params


def reference_forward(x, params):
    """Pure-JAX reference mimicking the kernel's bf16-input / f32-accumulate
    numerics (bf16*bf16 products are exact in f32)."""
    q = lambda a: a.astype(jnp.bfloat16).astype(jnp.float32)
    h = q(x)
    for name in ("1", "2", "3"):
        h = q(jnp.maximum(h @ q(params["w" + name]) + q(params["b" + name]), 0.0))
    return h @ q(params["wo"]) + q(params["bo"])


if __name__ == "__main__":
    key = jax.random.PRNGKey(0)
    key, kx = jax.random.split(key)

    batch = 8
    seq_len_f = 8  # module constructor arg

    x = jax.random.normal(kx, (batch, IN_F), jnp.float32)
    params = init_params(key, seq_len_f)

    _, _, _, n_pad = _choose_tiles(batch, seq_len_f)
    wh_pack, wo_pack = pack_params(params, seq_len_f, n_pad)

    out = pp_mlp_forward(x, wh_pack, wo_pack, seq_len_f)
    out = jax.block_until_ready(out)

    ref = reference_forward(x, params)
    assert out.shape == (batch, seq_len_f)
    assert jnp.allclose(out, ref, atol=1e-4, rtol=1e-4), "mismatch vs. reference"

    print("KERNEL_OK")
</pallas_src>

<mosaic_0001>
module attributes {stable_mosaic.version = 11 : i64} {
  func.func @_mlp_kernel(%arg0: i32, %arg1: i32, %arg2: memref<16x128xbf16, #tpu.memory_space<vmem>>, %arg3: memref<3x128x128xbf16, #tpu.memory_space<vmem>>, %arg4: memref<128x128xbf16, #tpu.memory_space<vmem>>, %arg5: memref<16x128xf32, #tpu.memory_space<vmem>>, %arg6: memref<16x128xbf16, #tpu.memory_space<vmem>>) attributes {dimension_semantics = [#tpu.dimension_semantics<parallel>, #tpu.dimension_semantics<arbitrary>], iteration_bounds = array<i64: 1, 1>, scalar_prefetch = 0 : i64, scratch_operands = 1 : i64, tpu.core_type = #tpu.core_type<tc>, window_params = [{transform_indices = @transform_0, window_bounds = array<i64: 16, 128>}, {pipeline_mode = #tpu.pipeline_mode<synchronous>, transform_indices = @transform_1, window_bounds = array<i64: 3, 128, 128>}, {transform_indices = @transform_2, window_bounds = array<i64: 128, 128>}, {transform_indices = @transform_3, window_bounds = array<i64: 16, 128>}]} {
    %c0_i32 = arith.constant 0 : i32
    %0 = arith.cmpi eq, %arg1, %c0_i32 : i32
    %1 = arith.extui %0 : i1 to i32
    %c0_i32_0 = arith.constant 0 : i32
    %2 = arith.cmpi ne, %1, %c0_i32_0 : i32
    scf.if %2 {
      %c0_6 = arith.constant 0 : index
      %c0_7 = arith.constant 0 : index
      %7 = vector.load %arg2[%c0_6, %c0_7] : memref<16x128xbf16, #tpu.memory_space<vmem>>, vector<16x128xbf16>
      %c0_8 = arith.constant 0 : index
      %c0_9 = arith.constant 0 : index
      %c0_10 = arith.constant 0 : index
      %8 = vector.load %arg3[%c0_8, %c0_9, %c0_10] : memref<3x128x128xbf16, #tpu.memory_space<vmem>>, vector<1x128x128xbf16>
      %9 = vector.shape_cast %8 : vector<1x128x128xbf16> to vector<128x128xbf16>
      %cst_11 = arith.constant dense<0.000000e+00> : vector<16x128xf32>
      %10 = tpu.matmul %7, %9, %cst_11 {dimension_numbers = #tpu.dot_dimension_numbers<[1], [0], [0], [1], [0, 0, 1, 1], [], []>} : vector<16x128xbf16>, vector<128x128xbf16>, vector<16x128xf32> -> vector<16x128xf32>
      %cst_12 = arith.constant 0.000000e+00 : f32
      %11 = vector.broadcast %cst_12 : f32 to vector<16x128xf32>
      %12 = arith.maximumf %10, %11 : vector<16x128xf32>
      %13 = arith.truncf %12 : vector<16x128xf32> to vector<16x128xbf16>
      %c1 = arith.constant 1 : index
      %c0_13 = arith.constant 0 : index
      %c0_14 = arith.constant 0 : index
      %14 = vector.load %arg3[%c1, %c0_13, %c0_14] : memref<3x128x128xbf16, #tpu.memory_space<vmem>>, vector<1x128x128xbf16>
      %15 = vector.shape_cast %14 : vector<1x128x128xbf16> to vector<128x128xbf16>
      %cst_15 = arith.constant dense<0.000000e+00> : vector<16x128xf32>
      %16 = tpu.matmul %13, %15, %cst_15 {dimension_numbers = #tpu.dot_dimension_numbers<[1], [0], [0], [1], [0, 0, 1, 1], [], []>} : vector<16x128xbf16>, vector<128x128xbf16>, vector<16x128xf32> -> vector<16x128xf32>
      %cst_16 = arith.constant 0.000000e+00 : f32
      %17 = vector.broadcast %cst_16 : f32 to vector<16x128xf32>
      %18 = arith.maximumf %16, %17 : vector<16x128xf32>
      %19 = arith.truncf %18 : vector<16x128xf32> to vector<16x128xbf16>
      %c2 = arith.constant 2 : index
      %c0_17 = arith.constant 0 : index
      %c0_18 = arith.constant 0 : index
      %20 = vector.load %arg3[%c2, %c0_17, %c0_18] : memref<3x128x128xbf16, #tpu.memory_space<vmem>>, vector<1x128x128xbf16>
      %21 = vector.shape_cast %20 : vector<1x128x128xbf16> to vector<128x128xbf16>
      %cst_19 = arith.constant dense<0.000000e+00> : vector<16x128xf32>
      %22 = tpu.matmul %19, %21, %cst_19 {dimension_numbers = #tpu.dot_dimension_numbers<[1], [0], [0], [1], [0, 0, 1, 1], [], []>} : vector<16x128xbf16>, vector<128x128xbf16>, vector<16x128xf32> -> vector<16x128xf32>
      %cst_20 = arith.constant 0.000000e+00 : f32
      %23 = vector.broadcast %cst_20 : f32 to vector<16x128xf32>
      %24 = arith.maximumf %22, %23 : vector<16x128xf32>
      %25 = arith.truncf %24 : vector<16x128xf32> to vector<16x128xbf16>
      %c0_21 = arith.constant 0 : index
      %c0_22 = arith.constant 0 : index
      %26 = vector.load %arg6[%c0_21, %c0_22] : memref<16x128xbf16, #tpu.memory_space<vmem>>, vector<16x128xbf16>
      tpu.vector_store %arg6[%c0_21, %c0_22], %25 {strides = array<i32>} : memref<16x128xbf16, #tpu.memory_space<vmem>>, vector<16x128xbf16>,
    } else {
    }
    %c0 = arith.constant 0 : index
    %c0_1 = arith.constant 0 : index
    %3 = vector.load %arg6[%c0, %c0_1] : memref<16x128xbf16, #tpu.memory_space<vmem>>, vector<16x128xbf16>
    %c0_2 = arith.constant 0 : index
    %c0_3 = arith.constant 0 : index
    %4 = vector.load %arg4[%c0_2, %c0_3] : memref<128x128xbf16, #tpu.memory_space<vmem>>, vector<128x128xbf16>
    %cst = arith.constant dense<0.000000e+00> : vector<16x128xf32>
    %5 = tpu.matmul %3, %4, %cst {dimension_numbers = #tpu.dot_dimension_numbers<[1], [0], [0], [1], [0, 0, 1, 1], [], []>} : vector<16x128xbf16>, vector<128x128xbf16>, vector<16x128xf32> -> vector<16x128xf32>
    %c0_4 = arith.constant 0 : index
    %c0_5 = arith.constant 0 : index
    %6 = vector.load %arg5[%c0_4, %c0_5] : memref<16x128xf32, #tpu.memory_space<vmem>>, vector<16x128xf32>
    tpu.vector_store %arg5[%c0_4, %c0_5], %5 {strides = array<i32>} : memref<16x128xf32, #tpu.memory_space<vmem>>, vector<16x128xf32>,
    return
  }
  func.func @transform_0(%arg0: i32, %arg1: i32) -> (i32, i32) {
    %c0_i32 = arith.constant 0 : i32
    %c0_i32_0 = arith.constant 0 : i32
    return %arg0, %c0_i32 : i32, i32
  }
  func.func @transform_1(%arg0: i32, %arg1: i32) -> (i32, i32, i32) {
    %c0_i32 = arith.constant 0 : i32
    %c0_i32_0 = arith.constant 0 : i32
    %c0_i32_1 = arith.constant 0 : i32
    %c0_i32_2 = arith.constant 0 : i32
    return %c0_i32, %c0_i32_0, %c0_i32_1 : i32, i32, i32
  }
  func.func @transform_2(%arg0: i32, %arg1: i32) -> (i32, i32) {
    %c0_i32 = arith.constant 0 : i32
    %c0_i32_0 = arith.constant 0 : i32
    return %c0_i32, %arg1 : i32, i32
  }
  func.func @transform_3(%arg0: i32, %arg1: i32) -> (i32, i32) {
    %c0_i32 = arith.constant 0 : i32
    return %arg0, %arg1 : i32, i32
  }
}

</mosaic_0001>

<bundles_post_ra>
// kernel: pp_mlp_forward.1
= control target key start
LH: loop header
LB: loop body
LE: loop exit
PB: predicated region body
PF: predicated region fallthrough
CT: control target
= control target key end

     0   :  { %8 = vsyncpa [#allocation4], 0  ;;  %s716_s12 = smov [#allocation3]   ;;  %s817_s0 = inlined_call_operand.vmem [shape: bf16[16,128], index: 0, kind: input, shape index: {}]   ;;  %s818_s1 = inlined_call_operand.hbm [shape: bf16[3,128,128], index: 1, kind: input, shape index: {}]   ;;  %s819_s2 = inlined_call_operand.vmem [shape: bf16[128,128], index: 2, kind: input, shape index: {}]   ;;  %s820_s3 = inlined_call_operand.vmem [shape: f32[16,128], index: 3, kind: output, shape index: {}]  }
   0x1   :  { %s16_s13 = sshll.u32 %s716_s12, 4  ;;  %s17_s13 = int_to_ptr.vmem [resolvable:$true] %s16_s13 }
   0x2   :  { %s702_s14 = scalar_lea.vmem %s17_s13, 3072  ;;  %p707_p1 = scmp.lt.s32.totalorder %s17_s13, %s17_s13 }
   0x3   :  { %p703_p0 = scmp.ne.s32.totalorder %s17_s13, %s702_s14  ;;  %p708_p2 = scmp.lt.s32.totalorder %s702_s14, %s702_s14 }
   0x5   :  { %p709_p3 = por %p708_p2, %p707_p1 }
   0x7   :  { %p710_p4 = pnand %p709_p3, %p703_p0 }
   0x9   :  { %713 = shalt.err (!%p710_p4)
}
   0xa   :  { %s717_s15 = smov 64   ;;  %s718_s16 = smov 4  }
   0xb   :  { %22 = dma.hbm_to_vmem [thread:$0]  %s818_s1, 3072, %s17_s13, [#allocation4], %s717_s15, %s717_s15, %s718_s16  }
   0xc   :  { %714 = dma.done.wait [#allocation4], 3072  }
   0xd   :  { %715 = vsyncadd [#allocation4], 4294964224  ;;  %v719_v0 = vmov 0.0   ;;  %vm720_vm0 = vmmov 0   ;;  %v660_v1 = vld [vmem:[#allocation3 + $0x38] sm:$0xff]   ;;  %v661_v2 = vld [vmem:[#allocation3 + $0x30] sm:$0xff]  }
   0xe   :  { %575 = vmatprep.subr.bf16.mxu0 %v719_v0  ;;  %591 = vmatprep.mubr.msk.bf16.mxu0 %vm720_vm0, %v719_v0  ;;  %v662_v3 = vld [vmem:[#allocation3 + $0x28] sm:$0xff]   ;;  %v669_v4 = vld [vmem:[#allocation3 + $0x78] sm:$0xff]   ;;  %v663_v5 = vld [vmem:[#allocation3 + $0x20] sm:$0xff]  }
   0xf   :  { %595 = vmatprep.subr.bf16.mxu1 %v719_v0  ;;  %611 = vmatprep.mubr.msk.bf16.mxu1 %vm720_vm0, %v719_v0  ;;  %v670_v6 = vld [vmem:[#allocation3 + $0x70] sm:$0xff]   ;;  %v664_v7 = vld [vmem:[#allocation3 + $0x18] sm:$0xff]   ;;  %v671_v8 = vld [vmem:[#allocation3 + $0x68] sm:$0xff]  }
  0x10   :  { %576 = vmatpush3.bf16.msra.mxu0 %v660_v1  ;;  %596 = vmatpush3.bf16.msra.mxu1 %v669_v4  ;;  %v665_v9 = vld [vmem:[#allocation3 + $0x10] sm:$0xff]   ;;  %v672_v10 = vld [vmem:[#allocation3 + $0x60] sm:$0xff]   ;;  %v666_v11 = vld [vmem:[#allocation3 + $0x8] sm:$0xff]  }
  0x11   :  { %577 = vmatprep.subr.bf16.mxu0 %v719_v0  ;;  %597 = vmatprep.subr.bf16.mxu1 %v719_v0  ;;  %v673_v12 = vld [vmem:[#allocation3 + $0x58] sm:$0xff]   ;;  %v667_v13 = vld [vmem:[#allocation3] sm:$0xff]   ;;  %v674_v14 = vld [vmem:[#allocation3 + $0x50] sm:$0xff]  }
  0x12   :  { %v668_v15 = vld [vmem:[%s817_s0] sm:$0xff]   ;;  %v675_v16 = vld [vmem:[#allocation3 + $0x48] sm:$0xff]   ;;  %v676_v17 = vld [vmem:[#allocation3 + $0x40] sm:$0xff]  }
  0x13   :  { %v677_v18 = vld [vmem:[#allocation3 + $0xb8] sm:$0xff]   ;;  %v678_v19 = vld [vmem:[#allocation3 + $0xb0] sm:$0xff]   ;;  %v679_v20 = vld [vmem:[#allocation3 + $0xa8] sm:$0xff]  }
  0x14   :  { %578 = vmatpush3.bf16.msra.mxu0 %v661_v2  ;;  %598 = vmatpush3.bf16.msra.mxu1 %v670_v6  ;;  %v680_v21 = vld [vmem:[#allocation3 + $0xa0] sm:$0xff]   ;;  %v681_v22 = vld [vmem:[#allocation3 + $0x98] sm:$0xff]   ;;  %v682_v23 = vld [vmem:[#allocation3 + $0x90] sm:$0xff]  }
  0x15   :  { %579 = vmatprep.subr.bf16.mxu0 %v719_v0  ;;  %599 = vmatprep.subr.bf16.mxu1 %v719_v0  ;;  %v683_v31 = vld [vmem:[#allocation3 + $0x88] sm:$0xff]   ;;  %v684_v32 = vld [vmem:[#allocation3 + $0x80] sm:$0xff]   ;;  %v685_v33 = vld [vmem:[%s819_s2 + $0x38] sm:$0xff]  }
  0x16   :  { %v686_v34 = vld [vmem:[%s819_s2 + $0x30] sm:$0xff]   ;;  %v687_v35 = vld [vmem:[%s819_s2 + $0x28] sm:$0xff]   ;;  %v688_v43 = vld [vmem:[%s819_s2 + $0x20] sm:$0xff]  }
  0x17   :  { %v689_v44 = vld [vmem:[%s819_s2 + $0x18] sm:$0xff]   ;;  %v690_v45 = vld [vmem:[%s819_s2 + $0x10] sm:$0xff]   ;;  %v691_v46 = vld [vmem:[%s819_s2 + $0x8] sm:$0xff]  }
  0x18   :  { %580 = vmatpush3.bf16.msra.mxu0 %v662_v3  ;;  %600 = vmatpush3.bf16.msra.mxu1 %v671_v8  ;;  %v692_v47 = vld [vmem:[%s819_s2] sm:$0xff]  }
  0x19   :  { %581 = vmatprep.subr.bf16.mxu0 %v719_v0  ;;  %601 = vmatprep.subr.bf16.mxu1 %v719_v0 }
  0x1c   :  { %582 = vmatpush3.bf16.msra.mxu0 %v663_v5  ;;  %602 = vmatpush3.bf16.msra.mxu1 %v672_v10 }
  0x1d   :  { %583 = vmatprep.subr.bf16.mxu0 %v719_v0  ;;  %603 = vmatprep.subr.bf16.mxu1 %v719_v0 }
  0x20   :  { %584 = vmatpush3.bf16.msra.mxu0 %v664_v7  ;;  %604 = vmatpush3.bf16.msra.mxu1 %v673_v12 }
  0x21   :  { %585 = vmatprep.subr.bf16.mxu0 %v719_v0  ;;  %605 = vmatprep.subr.bf16.mxu1 %v719_v0 }
  0x24   :  { %586 = vmatpush3.bf16.msra.mxu0 %v665_v9  ;;  %606 = vmatpush3.bf16.msra.mxu1 %v674_v14 }
  0x25   :  { %587 = vmatprep.subr.bf16.mxu0 %v719_v0  ;;  %607 = vmatprep.subr.bf16.mxu1 %v719_v0 }
  0x28   :  { %588 = vmatpush3.bf16.msra.mxu0 %v666_v11  ;;  %608 = vmatpush3.bf16.msra.mxu1 %v675_v16 }
  0x29   :  { %589 = vmatprep.subr.bf16.mxu0 %v719_v0  ;;  %609 = vmatprep.subr.bf16.mxu1 %v719_v0 }
  0x2c   :  { %590 = vmatpush3.bf16.msra.mxu0 %v667_v13  ;;  %610 = vmatpush3.bf16.msra.mxu1 %v676_v17 }
  0x2d   :  { %615 = vmatprep.subr.bf16.mxu0 %v719_v0  ;;  %635 = vmatprep.subr.bf16.mxu1 %v719_v0 }
  0x2f   :  { %592 = vmatmul.mubr.bf16.vlgmr.msra.gmra.mxu0 %v668_v15 }
  0x30   :  { %631 = vmatprep.mubr.msk.bf16.mxu0 %vm720_vm0, %v719_v0  ;;  %616 = vmatpush3.bf16.msra.mxu0 %v677_v18 }
  0x31   :  { %617 = vmatprep.subr.bf16.mxu0 %v719_v0 }
  0x34   :  { %618 = vmatpush3.bf16.msra.mxu0 %v678_v19 }
  0x35   :  { %619 = vmatprep.subr.bf16.mxu0 %v719_v0 }
  0x38   :  { %620 = vmatpush3.bf16.msra.mxu0 %v679_v20 }
  0x39   :  { %621 = vmatprep.subr.bf16.mxu0 %v719_v0 }
  0x3c   :  { %622 = vmatpush3.bf16.msra.mxu0 %v680_v21 }
  0x3d   :  { %623 = vmatprep.subr.bf16.mxu0 %v719_v0 }
  0x40   :  { %624 = vmatpush3.bf16.msra.mxu0 %v681_v22 }
  0x41   :  { %625 = vmatprep.subr.bf16.mxu0 %v719_v0 }
  0x44   :  { %626 = vmatpush3.bf16.msra.mxu0 %v682_v23 }
  0x45   :  { %627 = vmatprep.subr.bf16.mxu0 %v719_v0 }
  0x48   :  { %628 = vmatpush3.bf16.msra.mxu0 %v683_v31 }
  0x49   :  { %629 = vmatprep.subr.bf16.mxu0 %v719_v0 }
  0x4c   :  { %630 = vmatpush3.bf16.msra.mxu0 %v684_v32 }
  0xef   :  { %v139_v24 = vpop.f32.mrf.mxu0 }
  0xf0   :  { %v146_v27 = vmax.f32 %v139_v24, 0.0 }
  0xf1   :  { %v593_v25 = vpop.f32.mrf.mxu0 }
  0xf3   :  { %v142_v26 = vpop.f32.mrf.mxu0 }
  0xf4   :  { %v147_v28 = vmax.f32 %v142_v26, 0.0 }
  0xf5   :  { %v594_v29 = vpop.f32.mrf.mxu0 }
  0xf6   :  { %v148_v30 = vpack.c.bf16 %v147_v28, %v146_v27 }
  0xf8   :  { %612 = vmatmul.mubr.bf16.vlgmr.msra.gmra.mxu1 %v148_v30 }
  0xf9   :  { %651 = vmatprep.mubr.msk.bf16.mxu1 %vm720_vm0, %v719_v0  ;;  %636 = vmatpush3.bf16.msra.mxu1 %v685_v33 }
  0xfa   :  { %637 = vmatprep.subr.bf16.mxu1 %v719_v0 }
  0xfd   :  { %638 = vmatpush3.bf16.msra.mxu1 %v686_v34 }
  0xfe   :  { %639 = vmatprep.subr.bf16.mxu1 %v719_v0 }
 0x101   :  { %640 = vmatpush3.bf16.msra.mxu1 %v687_v35 }
 0x102   :  { %641 = vmatprep.subr.bf16.mxu1 %v719_v0 }
 0x105   :  { %642 = vmatpush3.bf16.msra.mxu1 %v688_v43 }
 0x106   :  { %643 = vmatprep.subr.bf16.mxu1 %v719_v0 }
 0x109   :  { %644 = vmatpush3.bf16.msra.mxu1 %v689_v44 }
 0x10a   :  { %645 = vmatprep.subr.bf16.mxu1 %v719_v0 }
 0x10d   :  { %646 = vmatpush3.bf16.msra.mxu1 %v690_v45 }
 0x10e   :  { %647 = vmatprep.subr.bf16.mxu1 %v719_v0 }
 0x111   :  { %648 = vmatpush3.bf16.msra.mxu1 %v691_v46 }
 0x112   :  { %649 = vmatprep.subr.bf16.mxu1 %v719_v0 }
 0x115   :  { %650 = vmatpush3.bf16.msra.mxu1 %v692_v47 }
 0x1b8   :  { %v248_v36 = vpop.f32.mrf.mxu1 }
 0x1b9   :  { %v255_v39 = vmax.f32 %v248_v36, 0.0 }
 0x1ba   :  { %v613_v37 = vpop.f32.mrf.mxu1 }
 0x1bc   :  { %v251_v38 = vpop.f32.mrf.mxu1 }
 0x1bd   :  { %v256_v40 = vmax.f32 %v251_v38, 0.0 }
 0x1be   :  { %v614_v41 = vpop.f32.mrf.mxu1 }
 0x1bf   :  { %v257_v42 = vpack.c.bf16 %v256_v40, %v255_v39 }
 0x1c1   :  { %632 = vmatmul.mubr.bf16.vlgmr.msra.gmra.mxu0 %v257_v42 }
 0x281   :  { %v357_v48 = vpop.f32.mrf.mxu0 }
 0x282   :  { %v364_v51 = vmax.f32 %v357_v48, 0.0 }
 0x283   :  { %v633_v49 = vpop.f32.mrf.mxu0 }
 0x285   :  { %v360_v50 = vpop.f32.mrf.mxu0 }
 0x286   :  { %v365_v52 = vmax.f32 %v360_v50, 0.0 }
 0x287   :  { %v634_v53 = vpop.f32.mrf.mxu0 }
 0x288   :  { %v537_v54 = vpack.c.bf16 %v365_v52, %v364_v51 }
 0x28a   :  { %538 = vst [vmem:[#allocation2] sm:$0xff] %v537_v54  }
 0x291   :  { %v693_v55 = vld [vmem:[#allocation2] sm:$0xff]  }
 0x292   :  { %652 = vmatmul.mubr.bf16.vlgmr.msra.gmra.mxu1 %v693_v55 }
 0x352   :  { %v482_v56 = vpop.f32.mrf.mxu1 }
 0x353   :  { %489 = vst [vmem:[%s820_s3] sm:$0xff] %v482_v56 }
 0x354   :  { %v653_v57 = vpop.f32.mrf.mxu1 }
 0x356   :  { %v485_v58 = vpop.f32.mrf.mxu1 }
 0x357   :  { %490 = vst [vmem:[%s820_s3 + $0x8] sm:$0xff] %v485_v58 }
 0x358   :  { %v654_v59 = vpop.f32.mrf.mxu1 }
 0x359   :  { %495 = vsyncpa [#allocation4], 1 }

</bundles_post_ra>
